<compile_context>
chip_gen: v7x
topology: tpu7x:2x2x1
jax: 0.10.0
libtpu: 0.0.40
codegen_flags: <defaults>
</compile_context>

<pallas_src>
import functools

import jax
import jax.numpy as jnp
from jax.experimental import pallas as pl
from jax.experimental.pallas import tpu as pltpu


def _mlp_kernel(x_ref, w1_ref, b1_ref, w2_ref, b2_ref, o_ref):
    # Fused Linear -> ReLU -> Linear.
    #   x:  f32 tile, cast to bf16 in-kernel for the MXU.
    #   Accumulation, bias add and ReLU in f32 (VPU); store in bf16.
    x = x_ref[...].astype(jnp.bfloat16)                                # (TILE_B, K)
    h = jnp.dot(x, w1_ref[...], preferred_element_type=jnp.float32)    # f32 accumulator
    h = jnp.maximum(h + b1_ref[...], 0.0)                              # bias + ReLU (f32)
    h = h.astype(jnp.bfloat16)                                         # bf16 for 2nd MXU pass
    y = jnp.dot(h, w2_ref[...], preferred_element_type=jnp.float32) + b2_ref[...]
    o_ref[...] = y.astype(o_ref.dtype)                                 # bf16 lane-dense store


def _round_up(v, m):
    return ((v + m - 1) // m) * m


def prepare_params(w1, b1, w2, b2):
    """One-time weight prep: bf16 casts + lane padding of the output head.

    Called once (outside the per-forward path) so the only per-call weight
    traffic is the kernel's own resident-weight DMA.
    """
    LANE = 128
    in_f, hidden = w1.shape
    out_f = w2.shape[1]
    n_pad = max(LANE, _round_up(out_f, LANE))   # lane-dense output store

    w1p = w1.astype(jnp.bfloat16)                                       # (in_f, hidden)
    b1p = b1.reshape(1, hidden).astype(jnp.float32)                     # (1, hidden)
    w2p = jnp.pad(w2.astype(jnp.bfloat16), ((0, 0), (0, n_pad - out_f)))  # (hidden, n_pad)
    b2p = jnp.pad(b2.reshape(1, out_f).astype(jnp.float32),
                  ((0, 0), (0, n_pad - out_f)))                         # (1, n_pad)
    return w1p, b1p, w2p, b2p, out_f


def _pick_tile_b(batch, requested):
    # Large tiles amortize the ~0.35 us per-grid-step overhead, but keep at
    # least 2 grid steps so the "parallel" batch axis can split across v7x's
    # two TensorCores.  Sublane-align to 8.
    half = _round_up(max(pl.cdiv(batch, 2), 8), 8)
    tile = min(requested, half)
    return max(8, _round_up(tile, 8))


@functools.partial(jax.jit, static_argnames=("out_features", "tile_b"))
def mlp_forward(x, w1p, b1p, w2p, b2p, *, out_features, tile_b=512):
    """Fused MLP forward.

    x: [B, K] f32 (unpadded).  w1p/b1p/w2p/b2p from prepare_params().
    Returns bf16 logits [B, out_features].
    """
    batch, in_f = x.shape
    hidden = w1p.shape[1]
    n_pad = w2p.shape[1]

    tb = _pick_tile_b(batch, tile_b)
    b_pad = _round_up(batch, tb)

    xp = jnp.pad(x, ((0, b_pad - batch), (0, 0))) if b_pad > batch else x

    grid = (b_pad // tb,)
    out_padded = pl.pallas_call(
        _mlp_kernel,
        out_shape=jax.ShapeDtypeStruct((b_pad, n_pad), jnp.bfloat16),
        grid_spec=pl.GridSpec(
            grid=grid,
            in_specs=[
                pl.BlockSpec((tb, in_f),      lambda i: (i, 0)),   # x tile (pipelined, f32)
                pl.BlockSpec((in_f, hidden),  lambda i: (0, 0)),   # W1 resident (bf16)
                pl.BlockSpec((1, hidden),     lambda i: (0, 0)),   # b1 resident (f32)
                pl.BlockSpec((hidden, n_pad), lambda i: (0, 0)),   # W2 resident (bf16)
                pl.BlockSpec((1, n_pad),      lambda i: (0, 0)),   # b2 resident (f32)
            ],
            out_specs=pl.BlockSpec((tb, n_pad), lambda i: (i, 0)),
        ),
        compiler_params=pltpu.CompilerParams(
            dimension_semantics=("parallel",),   # shard batch tiles across TCs (v7x)
        ),
    )(xp, w1p, b1p, w2p, b2p)

    return out_padded[:batch, :out_features]


def reference_forward(x, w1, b1, w2, b2):
    # Same precision model as the kernel: bf16 matmul inputs, f32 accumulation,
    # f32 bias + ReLU, bf16 re-cast before the second matmul, bf16 output.
    xb = x.astype(jnp.bfloat16).astype(jnp.float32)
    w1b = w1.astype(jnp.bfloat16).astype(jnp.float32)
    w2b = w2.astype(jnp.bfloat16).astype(jnp.float32)
    h = jnp.maximum(xb @ w1b + b1, 0.0)
    hb = h.astype(jnp.bfloat16).astype(jnp.float32)
    y = hb @ w2b + b2
    return y.astype(jnp.bfloat16).astype(jnp.float32)


if __name__ == "__main__":
    # TODO(synk): ModernModule never defines self.net (abstract base); the MLP
    # below is the canonical net implied by ModelConfig(num_hiddens, output_size).
    key = jax.random.PRNGKey(0)
    k_x, k_w1, k_b1, k_w2, k_b2 = jax.random.split(key, 5)

    batch = 256            # 2 batch tiles of 128 -> exercises grid pipeline / megacore split
    in_features = 64       # fed unpadded; last block dim == full array dim
    num_hiddens = 256      # ModelConfig.num_hiddens
    output_size = 10       # ModelConfig.output_size (padded to 128 only for the store)

    x = jax.random.normal(k_x, (batch, in_features), dtype=jnp.float32)
    # Deterministic "torch.nn.Linear"-style init (uniform in +/- 1/sqrt(fan_in)).
    lim1 = 1.0 / jnp.sqrt(jnp.float32(in_features))
    lim2 = 1.0 / jnp.sqrt(jnp.float32(num_hiddens))
    w1 = jax.random.uniform(k_w1, (in_features, num_hiddens), jnp.float32, -lim1, lim1)
    b1 = jax.random.uniform(k_b1, (1, num_hiddens), jnp.float32, -lim1, lim1)
    w2 = jax.random.uniform(k_w2, (num_hiddens, output_size), jnp.float32, -lim2, lim2)
    b2 = jax.random.uniform(k_b2, (1, output_size), jnp.float32, -lim2, lim2)

    # One-time weight prep (hoisted out of the per-call path).
    w1p, b1p, w2p, b2p, out_f = prepare_params(w1, b1, w2, b2)

    out = mlp_forward(x, w1p, b1p, w2p, b2p, out_features=out_f, tile_b=512)
    out = jax.block_until_ready(out)

    ref = reference_forward(x, w1, b1, w2, b2)
    assert out.shape == (batch, output_size)
    assert jnp.allclose(out.astype(jnp.float32), ref, atol=5e-2, rtol=5e-2), \
        "mismatch vs reference"

    print("KERNEL_OK")
</pallas_src>

<mosaic_0001>
module attributes {stable_mosaic.version = 11 : i64} {
  func.func @_mlp_kernel(%arg0: i32, %arg1: memref<128x64xf32, #tpu.memory_space<vmem>>, %arg2: memref<64x256xbf16, #tpu.memory_space<vmem>>, %arg3: memref<1x256xf32, #tpu.memory_space<vmem>>, %arg4: memref<256x128xbf16, #tpu.memory_space<vmem>>, %arg5: memref<1x128xf32, #tpu.memory_space<vmem>>, %arg6: memref<128x128xbf16, #tpu.memory_space<vmem>>) attributes {dimension_semantics = [#tpu.dimension_semantics<parallel>], iteration_bounds = array<i64: 2>, scalar_prefetch = 0 : i64, scratch_operands = 0 : i64, tpu.core_type = #tpu.core_type<tc>, window_params = [{transform_indices = @transform_0, window_bounds = array<i64: 128, 64>}, {pipeline_mode = #tpu.pipeline_mode<synchronous>, transform_indices = @transform_1, window_bounds = array<i64: 64, 256>}, {pipeline_mode = #tpu.pipeline_mode<synchronous>, transform_indices = @transform_2, window_bounds = array<i64: 1, 256>}, {pipeline_mode = #tpu.pipeline_mode<synchronous>, transform_indices = @transform_3, window_bounds = array<i64: 256, 128>}, {pipeline_mode = #tpu.pipeline_mode<synchronous>, transform_indices = @transform_4, window_bounds = array<i64: 1, 128>}, {transform_indices = @transform_5, window_bounds = array<i64: 128, 128>}]} {
    %c0 = arith.constant 0 : index
    %c0_0 = arith.constant 0 : index
    %0 = vector.load %arg1[%c0, %c0_0] : memref<128x64xf32, #tpu.memory_space<vmem>>, vector<128x64xf32>
    %1 = arith.truncf %0 : vector<128x64xf32> to vector<128x64xbf16>
    %c0_1 = arith.constant 0 : index
    %c0_2 = arith.constant 0 : index
    %2 = vector.load %arg2[%c0_1, %c0_2] : memref<64x256xbf16, #tpu.memory_space<vmem>>, vector<64x256xbf16>
    %cst = arith.constant dense<0.000000e+00> : vector<128x256xf32>
    %3 = tpu.matmul %1, %2, %cst {dimension_numbers = #tpu.dot_dimension_numbers<[1], [0], [0], [1], [0, 0, 1, 1], [], []>} : vector<128x64xbf16>, vector<64x256xbf16>, vector<128x256xf32> -> vector<128x256xf32>
    %c0_3 = arith.constant 0 : index
    %c0_4 = arith.constant 0 : index
    %4 = vector.load %arg3[%c0_3, %c0_4] : memref<1x256xf32, #tpu.memory_space<vmem>>, vector<1x256xf32>
    %5 = vector.broadcast %4 : vector<1x256xf32> to vector<128x256xf32>
    %6 = arith.addf %3, %5 : vector<128x256xf32>
    %cst_5 = arith.constant 0.000000e+00 : f32
    %7 = vector.broadcast %cst_5 : f32 to vector<128x256xf32>
    %8 = arith.maximumf %6, %7 : vector<128x256xf32>
    %9 = arith.truncf %8 : vector<128x256xf32> to vector<128x256xbf16>
    %c0_6 = arith.constant 0 : index
    %c0_7 = arith.constant 0 : index
    %10 = vector.load %arg4[%c0_6, %c0_7] : memref<256x128xbf16, #tpu.memory_space<vmem>>, vector<256x128xbf16>
    %cst_8 = arith.constant dense<0.000000e+00> : vector<128x128xf32>
    %11 = tpu.matmul %9, %10, %cst_8 {dimension_numbers = #tpu.dot_dimension_numbers<[1], [0], [0], [1], [0, 0, 1, 1], [], []>} : vector<128x256xbf16>, vector<256x128xbf16>, vector<128x128xf32> -> vector<128x128xf32>
    %c0_9 = arith.constant 0 : index
    %c0_10 = arith.constant 0 : index
    %12 = vector.load %arg5[%c0_9, %c0_10] : memref<1x128xf32, #tpu.memory_space<vmem>>, vector<1x128xf32>
    %13 = vector.broadcast %12 : vector<1x128xf32> to vector<128x128xf32>
    %14 = arith.addf %11, %13 : vector<128x128xf32>
    %15 = arith.truncf %14 : vector<128x128xf32> to vector<128x128xbf16>
    %c0_11 = arith.constant 0 : index
    %c0_12 = arith.constant 0 : index
    %16 = vector.load %arg6[%c0_11, %c0_12] : memref<128x128xbf16, #tpu.memory_space<vmem>>, vector<128x128xbf16>
    tpu.vector_store %arg6[%c0_11, %c0_12], %15 {strides = array<i32>} : memref<128x128xbf16, #tpu.memory_space<vmem>>, vector<128x128xbf16>,
    return
  }
  func.func @transform_0(%arg0: i32) -> (i32, i32) {
    %c0_i32 = arith.constant 0 : i32
    %c0_i32_0 = arith.constant 0 : i32
    return %arg0, %c0_i32 : i32, i32
  }
  func.func @transform_1(%arg0: i32) -> (i32, i32) {
    %c0_i32 = arith.constant 0 : i32
    %c0_i32_0 = arith.constant 0 : i32
    %c0_i32_1 = arith.constant 0 : i32
    return %c0_i32, %c0_i32_0 : i32, i32
  }
  func.func @transform_2(%arg0: i32) -> (i32, i32) {
    %c0_i32 = arith.constant 0 : i32
    %c0_i32_0 = arith.constant 0 : i32
    %c0_i32_1 = arith.constant 0 : i32
    return %c0_i32, %c0_i32_0 : i32, i32
  }
  func.func @transform_3(%arg0: i32) -> (i32, i32) {
    %c0_i32 = arith.constant 0 : i32
    %c0_i32_0 = arith.constant 0 : i32
    %c0_i32_1 = arith.constant 0 : i32
    return %c0_i32, %c0_i32_0 : i32, i32
  }
  func.func @transform_4(%arg0: i32) -> (i32, i32) {
    %c0_i32 = arith.constant 0 : i32
    %c0_i32_0 = arith.constant 0 : i32
    %c0_i32_1 = arith.constant 0 : i32
    return %c0_i32, %c0_i32_0 : i32, i32
  }
  func.func @transform_5(%arg0: i32) -> (i32, i32) {
    %c0_i32 = arith.constant 0 : i32
    %c0_i32_0 = arith.constant 0 : i32
    return %arg0, %c0_i32 : i32, i32
  }
}

</mosaic_0001>

<bundles_post_ra>
// kernel: mlp_forward.1
= control target key start
LH: loop header
LB: loop body
LE: loop exit
PB: predicated region body
PF: predicated region fallthrough
CT: control target
= control target key end

     0   :  { %s1146_s18 = smov 0   ;;  %s1343_s0 = inlined_call_operand.vmem [shape: f32[256,64], index: 0, kind: input, shape index: {}]   ;;  %s1344_s1 = inlined_call_operand.vmem [shape: bf16[64,256], index: 1, kind: input, shape index: {}]   ;;  %s1345_s2 = inlined_call_operand.vmem [shape: f32[1,256], index: 2, kind: input, shape index: {}]   ;;  %s1346_s3 = inlined_call_operand.vmem [shape: bf16[256,128], index: 3, kind: input, shape index: {}]   ;;  %s1347_s4 = inlined_call_operand.vmem [shape: f32[1,128], index: 4, kind: input, shape index: {}]   ;;  %s1348_s5 = inlined_call_operand.vmem [shape: bf16[256,128], index: 5, kind: output, shape index: {}]  }
   0x1 LB: > { %s867_s19 = sadd.s32 4294967295, %s1113_s18   ;;  %p871_p0 = scmp.ge.s32.totalorder %s1113_s18, 1  ;;  %s1113_s18 = sphi %s1146_s18, %s15_s18  }
   0x2   : > { %p188_p1 = scmp.lt.s32.totalorder %s1113_s18, 3 }
   0x4   : > { %p189_p2 = pnand %p871_p0, %p188_p1 }
   0x5   : > { %v1079_v0 = vld [vmem:[%s1344_s1 + $0x4] ss:$8 sps:$4 sm:$0xff] (!%p189_p2)   ;;  %s872_s22 = sshll.u32 (!%p189_p2), %s867_s19, 4  ;;  %v1081_v1 = vld [vmem:[%s1344_s1] ss:$8 sps:$4 sm:$0xff] (!%p189_p2)   ;;  %v1115_v2 = vmov (!%p189_p2), 0   ;;  %v263_v49 = vlaneseq (!%p189_p2) }
   0x6   : > { %192 = sbr.rel (%p189_p2) target bundleno = 522 (0x20a), region = 40  ;;  %370 = vmatprep.mubr.bf16.mxu0 (!%p189_p2), %v1115_v2  ;;  %p217_p3 = scmp.lt.s32.totalorder (!%p189_p2), %s872_s22, 31  ;;  %338 = vmatprep.subr.bf16.mxu0 (!%p189_p2), %v1079_v0  ;;  %v1082_v3 = vld [vmem:[%s1344_s1 + $0x14] ss:$8 sps:$4 sm:$0xff] (!%p189_p2)   ;;  %v1084_v4 = vld [vmem:[%s1344_s1 + $0x10] ss:$8 sps:$4 sm:$0xff] (!%p189_p2)  }
   0x7   : > { %339 = vmatpush1.bf16.msra.mxu0 (!%p189_p2), %v1081_v1  ;;  %v1085_v5 = vld [vmem:[%s1344_s1 + $0x24] ss:$8 sps:$4 sm:$0xff] (!%p189_p2)   ;;  %v1087_v7 = vld [vmem:[%s1344_s1 + $0x20] ss:$8 sps:$4 sm:$0xff] (!%p189_p2)   ;;  %v1088_v8 = vld [vmem:[%s1344_s1 + $0x34] ss:$8 sps:$4 sm:$0xff] (!%p189_p2)  }
   0x8   : > { %340 = vmatprep.subr.bf16.mxu0 (!%p189_p2), %v1082_v3  ;;  %v1091_v6 = vld [vmem:[%s1346_s3 + $0x40] sm:$0xff] (!%p189_p2)   ;;  %v1090_v9 = vld [vmem:[%s1344_s1 + $0x30] ss:$8 sps:$4 sm:$0xff] (!%p189_p2)   ;;  %v1093_v13 = vld [vmem:[%s1346_s3 + $0x48] sm:$0xff] (!%p189_p2)   ;;  %vm313_vm0 = vcmask (!%p189_p2), 523264   ;;  %v264_v50 = vshrl.u32 (!%p189_p2), %v263_v49, 7 }
   0x9   : > { %1054 = vmatprep.subr.bf16.mxu1 (!%p189_p2), %v1091_v6  ;;  %v1092_v12 = vld [vmem:[%s1346_s3] sm:$0xff] (!%p189_p2)   ;;  %v1094_v15 = vld [vmem:[%s1346_s3 + $0x8] sm:$0xff] (!%p189_p2)   ;;  %v1095_v17 = vld [vmem:[%s1346_s3 + $0x50] sm:$0xff] (!%p189_p2)  }
   0xa   : > { %1062 = vmatpush3.bf16.msra.mxu1 (!%p189_p2), %v1092_v12  ;;  %v1096_v19 = vld [vmem:[%s1346_s3 + $0x10] sm:$0xff] (!%p189_p2)   ;;  %v1097_v20 = vld [vmem:[%s1346_s3 + $0x58] sm:$0xff] (!%p189_p2)   ;;  %v1099_v23 = vld [vmem:[%s1346_s3 + $0x60] sm:$0xff] (!%p189_p2)   ;;  %v265_v51 = vsub.s32 (!%p189_p2), 0, %v264_v50  ;;  %v269_v53 = vsub.s32 (!%p189_p2), 1, %v264_v50 }
   0xb   : > { %341 = vmatpush1.bf16.msra.mxu0 (!%p189_p2), %v1084_v4  ;;  %1055 = vmatprep.subr.bf16.mxu1 (!%p189_p2), %v1093_v13  ;;  %v1098_v22 = vld [vmem:[%s1346_s3 + $0x18] sm:$0xff] (!%p189_p2)   ;;  %v1100_v26 = vld [vmem:[%s1346_s3 + $0x20] sm:$0xff] (!%p189_p2)   ;;  %v1101_v27 = vld [vmem:[%s1346_s3 + $0x68] sm:$0xff] (!%p189_p2)  }
   0xc   : > { %342 = vmatprep.subr.bf16.mxu0 (!%p189_p2), %v1085_v5  ;;  %v1102_v44 = vld [vmem:[%s1346_s3 + $0x28] sm:$0xff] (!%p189_p2)   ;;  %v1103_v45 = vld [vmem:[%s1346_s3 + $0x70] sm:$0xff] (!%p189_p2)   ;;  %v1105_v47 = vld [vmem:[%s1346_s3 + $0x78] sm:$0xff] (!%p189_p2)  }
   0xd   : > { %s1350_s22 = smov (!%p217_p3, %s872_s22), 31  ;;  %v1104_v46 = vld [vmem:[%s1346_s3 + $0x30] sm:$0xff]   ;;  %v1106_v48 = vld [vmem:[%s1346_s3 + $0x38] sm:$0xff]   ;;  %v261_v52 = vld [vmem:[%s1345_s2] sm:$0x3] }
   0xe   : > { %s873_s6 = sshll.u32 %s1350_s22, 3  ;;  %1063 = vmatpush3.bf16.msra.mxu1 %v1094_v15  ;;  %v1269_v54 = vrot.slane %v261_v52, %v265_v51  ;;  %v1271_v55 = vrot.slane %v261_v52, %v269_v53 }
   0xf   : > { %s1185_s15 = scalar_lea.vmem %s1343_s0, %s873_s6  ;;  %343 = vmatpush1.bf16.msra.mxu0 %v1087_v7  ;;  %1056 = vmatprep.subr.bf16.mxu1 %v1095_v17  ;;  %s875_s6 = sshll.u32 %s1350_s22, 2 }
  0x10   : > { %v229_v10 = vld [vmem:[%s1185_s15] sm:$0xff]  ;;  %v230_v11 = vld [vmem:[%s1185_s15 + $0x8] sm:$0xff]  ;;  %344 = vmatprep.subr.bf16.mxu0 %v1088_v8  ;;  %v231_v16 = vld [vmem:[%s1185_s15 + $0x10] sm:$0xff]  ;;  %s1316_s9 = scalar_lea.vmem %s1348_s5, %s875_s6 }
  0x11   : > { %v245_v14 = vpack.c.bf16 %v230_v11, %v229_v10  ;;  %v232_v18 = vld [vmem:[%s1185_s15 + $0x18] sm:$0xff]  ;;  %v233_v24 = vld [vmem:[%s1185_s15 + $0x20] sm:$0xff]  ;;  %v234_v25 = vld [vmem:[%s1185_s15 + $0x28] sm:$0xff] }
  0x12   : > { %v246_v21 = vpack.c.bf16 %v232_v18, %v231_v16  ;;  %1064 = vmatpush3.bf16.msra.mxu1 %v1096_v19  ;;  %v247_v28 = vpack.c.bf16 %v234_v25, %v233_v24  ;;  %v235_v29 = vld [vmem:[%s1185_s15 + $0x30] sm:$0xff]  ;;  %v236_v30 = vld [vmem:[%s1185_s15 + $0x38] sm:$0xff]  ;;  %v237_v32 = vld [vmem:[%s1185_s15 + $0x40] sm:$0xff] }
  0x13   : > { %345 = vmatpush1.bf16.msra.mxu0 %v1090_v9  ;;  %1057 = vmatprep.subr.bf16.mxu1 %v1097_v20  ;;  %v248_v31 = vpack.c.bf16 %v236_v30, %v235_v29  ;;  %v238_v33 = vld [vmem:[%s1185_s15 + $0x48] sm:$0xff]  ;;  %v239_v35 = vld [vmem:[%s1185_s15 + $0x50] sm:$0xff]  ;;  %v240_v36 = vld [vmem:[%s1185_s15 + $0x58] sm:$0xff] }
  0x14   : > { %990 = vmatprep.subr.bf16.mxu0 %v1091_v6  ;;  %v249_v34 = vpack.c.bf16 %v238_v33, %v237_v32  ;;  %v250_v37 = vpack.c.bf16 %v240_v36, %v239_v35  ;;  %v241_v38 = vld [vmem:[%s1185_s15 + $0x60] sm:$0xff]  ;;  %v242_v39 = vld [vmem:[%s1185_s15 + $0x68] sm:$0xff]  ;;  %v243_v41 = vld [vmem:[%s1185_s15 + $0x70] sm:$0xff] }
  0x15   : > { %v251_v40 = vpack.c.bf16 %v242_v39, %v241_v38  ;;  %v244_v42 = vld [vmem:[%s1185_s15 + $0x78] sm:$0xff] }
  0x16   : > { %884 = vmatmul.mubr.msk.bf16.vlgmr.msra.gmra.mrb[0].mxu0 %vm313_vm0, %v245_v14  ;;  %1065 = vmatpush3.bf16.msra.mxu1 %v1098_v22  ;;  %v252_v43 = vpack.c.bf16 %v244_v42, %v243_v41 }
  0x17   : > { %380 = vmatprep.mubr.bf16.mxu0 %v1115_v2  ;;  %991 = vmatpush3.bf16.msra.mxu0 %v1092_v12 }
  0x18   : > { %992 = vmatprep.subr.bf16.mxu0 %v1093_v13  ;;  %1058 = vmatprep.subr.bf16.mxu1 %v1099_v23 }
  0x1a   : > { %1066 = vmatpush3.bf16.msra.mxu1 %v1100_v26 }
  0x1b   : > { %993 = vmatpush3.bf16.msra.mxu0 %v1094_v15  ;;  %1059 = vmatprep.subr.bf16.mxu1 %v1101_v27 }
  0x1c   : > { %994 = vmatprep.subr.bf16.mxu0 %v1095_v17 }
  0x1e   : > { %885 = vmatmul.mubr.msk.bf16.gmra.mrb[4].mxu0 %vm313_vm0, %v246_v21  ;;  %1067 = vmatpush3.bf16.msra.mxu1 %v1102_v44 }
  0x1f   : > { %390 = vmatprep.mubr.bf16.mxu0 %v1115_v2  ;;  %995 = vmatpush3.bf16.msra.mxu0 %v1096_v19 }
  0x20   : > { %996 = vmatprep.subr.bf16.mxu0 %v1097_v20  ;;  %1060 = vmatprep.subr.bf16.mxu1 %v1103_v45 }
  0x22   : > { %1068 = vmatpush3.bf16.msra.mxu1 %v1104_v46 }
  0x23   : > { %997 = vmatpush3.bf16.msra.mxu0 %v1098_v22  ;;  %1061 = vmatprep.subr.bf16.mxu1 %v1105_v47 }
  0x24   : > { %998 = vmatprep.subr.bf16.mxu0 %v1099_v23 }
  0x26   : > { %886 = vmatmul.mubr.msk.bf16.gmra.mrb[8].mxu0 %vm313_vm0, %v247_v28  ;;  %1069 = vmatpush3.bf16.msra.mxu1 %v1106_v48 }
  0x27   : > { %400 = vmatprep.mubr.bf16.mxu0 %v1115_v2  ;;  %999 = vmatpush3.bf16.msra.mxu0 %v1100_v26 }
  0x28   : > { %1000 = vmatprep.subr.bf16.mxu0 %v1101_v27 }
  0x2b   : > { %1001 = vmatpush3.bf16.msra.mxu0 %v1102_v44 }
  0x2c   : > { %1002 = vmatprep.subr.bf16.mxu0 %v1103_v45 }
  0x2e   : > { %887 = vmatmul.mubr.msk.bf16.gmra.mrb[12].mxu0 %vm313_vm0, %v248_v31 }
  0x2f   : > { %410 = vmatprep.mubr.bf16.mxu0 %v1115_v2  ;;  %1003 = vmatpush3.bf16.msra.mxu0 %v1104_v46 }
  0x30   : > { %1004 = vmatprep.subr.bf16.mxu0 %v1105_v47 }
  0x33   : > { %1005 = vmatpush3.bf16.msra.mxu0 %v1106_v48 }
  0x36   : > { %888 = vmatmul.mubr.msk.bf16.gmra.mrb[16].mxu0 %vm313_vm0, %v249_v34 }
  0x37   : > { %420 = vmatprep.mubr.bf16.mxu0 %v1115_v2 }
  0x3e   : > { %889 = vmatmul.mubr.msk.bf16.gmra.mrb[20].mxu0 %vm313_vm0, %v250_v37 }
  0x3f   : > { %430 = vmatprep.mubr.bf16.mxu0 %v1115_v2 }
  0x46   : > { %890 = vmatmul.mubr.msk.bf16.gmra.mrb[24].mxu0 %vm313_vm0, %v251_v40 }
  0x47   : > { %440 = vmatprep.mubr.bf16.mxu0 %v1115_v2 }
  0x4e   : > { %891 = vmatmul.mubr.msk.bf16.gmra.mrb[28].mxu0 %vm313_vm0, %v252_v43 }
  0xe9   : > { %v372_v56 = vpop.f32.mrb[0].mxu0 }
  0xea   : > { %v373_v57 = vadd.f32 %v372_v56, %v1269_v54  ;;  %v374_v58 = vpop.f32.mrb[1].mxu0 }
  0xeb   : > { %v375_v59 = vadd.f32 %v374_v58, %v1271_v55  ;;  %v376_v60 = vpop.f32.mrb[2].mxu0 }
  0xec   : > { %v377_v61 = vadd.f32 %v376_v60, %v1269_v54  ;;  %v378_v62 = vpop.f32.mrb[3].mxu0  ;;  %v451_v0 = vmax.f32 %v373_v57, 0.0 }
  0xed   : > { %v379_v63 = vadd.f32 %v378_v62, %v1271_v55  ;;  %v452_v2 = vmax.f32 %v375_v59, 0.0 }
  0xee   : > { %v453_v1 = vmax.f32 %v377_v61, 0.0 }
  0xef   : > { %v454_v3 = vmax.f32 %v379_v63, 0.0 }
  0xf0   : > { %v483_v4 = vpack.c.bf16 %v453_v1, %v451_v0 }
  0xf1   : > { %v484_v5 = vpack.c.bf16 %v454_v3, %v452_v2  ;;  %v382_v6 = vpop.f32.mrb[4].mxu0 }
  0xf2   : > { %v383_v7 = vadd.f32 %v382_v6, %v1269_v54  ;;  %v384_v8 = vpop.f32.mrb[5].mxu0 }
  0xf3   : > { %v385_v9 = vadd.f32 %v384_v8, %v1271_v55  ;;  %v386_v10 = vpop.f32.mrb[6].mxu0  ;;  %666 = vmatprep.mubr.bf16.mxu0 %v484_v5 }
  0xf4   : > { %v387_v11 = vadd.f32 %v386_v10, %v1269_v54  ;;  %v388_v12 = vpop.f32.mrb[7].mxu0  ;;  %667 = vmatmul.mubr.bf16.vlgmr.msra.gmra.mrb[32].mxu0 %v483_v4  ;;  %v455_v14 = vmax.f32 %v383_v7, 0.0 }
  0xf5   : > { %v389_v13 = vadd.f32 %v388_v12, %v1271_v55  ;;  %v456_v16 = vmax.f32 %v385_v9, 0.0 }
  0xf6   : > { %v457_v15 = vmax.f32 %v387_v11, 0.0 }
  0xf7   : > { %v458_v17 = vmax.f32 %v389_v13, 0.0 }
  0xf8   : > { %v485_v18 = vpack.c.bf16 %v457_v15, %v455_v14 }
  0xf9   : > { %v392_v19 = vpop.f32.mrb[8].mxu0  ;;  %v486_v20 = vpack.c.bf16 %v458_v17, %v456_v16 }
  0xfa   : > { %v393_v21 = vadd.f32 %v392_v19, %v1269_v54  ;;  %v394_v22 = vpop.f32.mrb[9].mxu0 }
  0xfb   : > { %v395_v23 = vadd.f32 %v394_v22, %v1271_v55  ;;  %v396_v24 = vpop.f32.mrb[10].mxu0  ;;  %674 = vmatprep.mubr.bf16.mxu1 %v486_v20 }
  0xfc   : > { %v397_v25 = vadd.f32 %v396_v24, %v1269_v54  ;;  %v398_v26 = vpop.f32.mrb[11].mxu0  ;;  %675 = vmatmul.mubr.bf16.vlgmr.msra.gmra.mrb[0].mxu1 %v485_v18  ;;  %v459_v28 = vmax.f32 %v393_v21, 0.0 }
  0xfd   : > { %v399_v27 = vadd.f32 %v398_v26, %v1271_v55  ;;  %v460_v30 = vmax.f32 %v395_v23, 0.0 }
  0xfe   : > { %v461_v29 = vmax.f32 %v397_v25, 0.0 }
  0xff   : > { %v462_v31 = vmax.f32 %v399_v27, 0.0 }
 0x100   : > { %v487_v32 = vpack.c.bf16 %v461_v29, %v459_v28 }
 0x101   : > { %v488_v33 = vpack.c.bf16 %v462_v31, %v460_v30  ;;  %v402_v34 = vpop.f32.mrb[12].mxu0 }
 0x102   : > { %v403_v35 = vadd.f32 %v402_v34, %v1269_v54  ;;  %v404_v36 = vpop.f32.mrb[13].mxu0 }
 0x103   : > { %v405_v37 = vadd.f32 %v404_v36, %v1271_v55  ;;  %v406_v38 = vpop.f32.mrb[14].mxu0  ;;  %682 = vmatprep.mubr.bf16.mxu1 %v488_v33 }
 0x104   : > { %v407_v39 = vadd.f32 %v406_v38, %v1269_v54  ;;  %v408_v40 = vpop.f32.mrb[15].mxu0  ;;  %683 = vmatmul.mubr.bf16.gmra.mrb[4].mxu1 %v487_v32  ;;  %v463_v42 = vmax.f32 %v403_v35, 0.0 }
 0x105   : > { %v409_v41 = vadd.f32 %v408_v40, %v1271_v55  ;;  %v464_v44 = vmax.f32 %v405_v37, 0.0 }
 0x106   : > { %v465_v43 = vmax.f32 %v407_v39, 0.0 }
 0x107   : > { %v466_v45 = vmax.f32 %v409_v41, 0.0 }
 0x108   : > { %v489_v46 = vpack.c.bf16 %v465_v43, %v463_v42 }
 0x109   : > { %v490_v47 = vpack.c.bf16 %v466_v45, %v464_v44  ;;  %v412_v48 = vpop.f32.mrb[16].mxu0 }
 0x10a   : > { %v413_v49 = vadd.f32 %v412_v48, %v1269_v54  ;;  %v414_v50 = vpop.f32.mrb[17].mxu0 }
 0x10b   : > { %v415_v51 = vadd.f32 %v414_v50, %v1271_v55  ;;  %v416_v52 = vpop.f32.mrb[18].mxu0  ;;  %690 = vmatprep.mubr.bf16.mxu1 %v490_v47 }
 0x10c   : > { %v417_v53 = vadd.f32 %v416_v52, %v1269_v54  ;;  %v418_v56 = vpop.f32.mrb[19].mxu0  ;;  %691 = vmatmul.mubr.bf16.gmra.mrb[8].mxu1 %v489_v46  ;;  %v467_v58 = vmax.f32 %v413_v49, 0.0 }
 0x10d   : > { %v419_v57 = vadd.f32 %v418_v56, %v1271_v55  ;;  %v468_v60 = vmax.f32 %v415_v51, 0.0 }
 0x10e   : > { %v469_v59 = vmax.f32 %v417_v53, 0.0 }
 0x10f   : > { %v470_v61 = vmax.f32 %v419_v57, 0.0 }
 0x110   : > { %v491_v62 = vpack.c.bf16 %v469_v59, %v467_v58 }
 0x111   : > { %v492_v63 = vpack.c.bf16 %v470_v61, %v468_v60  ;;  %v422_v0 = vpop.f32.mrb[20].mxu0 }
 0x112   : > { %v423_v1 = vadd.f32 %v422_v0, %v1269_v54  ;;  %v424_v2 = vpop.f32.mrb[21].mxu0 }
 0x113   : > { %v425_v3 = vadd.f32 %v424_v2, %v1271_v55  ;;  %v426_v4 = vpop.f32.mrb[22].mxu0  ;;  %698 = vmatprep.mubr.bf16.mxu1 %v492_v63 }
 0x114   : > { %v427_v5 = vadd.f32 %v426_v4, %v1269_v54  ;;  %v428_v6 = vpop.f32.mrb[23].mxu0  ;;  %699 = vmatmul.mubr.bf16.gmra.mrb[12].mxu1 %v491_v62  ;;  %v471_v8 = vmax.f32 %v423_v1, 0.0 }
 0x115   : > { %v429_v7 = vadd.f32 %v428_v6, %v1271_v55  ;;  %v472_v10 = vmax.f32 %v425_v3, 0.0 }
 0x116   : > { %v473_v9 = vmax.f32 %v427_v5, 0.0 }
 0x117   : > { %v474_v11 = vmax.f32 %v429_v7, 0.0 }
 0x118   : > { %v493_v12 = vpack.c.bf16 %v473_v9, %v471_v8 }
 0x119   : > { %v494_v13 = vpack.c.bf16 %v474_v11, %v472_v10  ;;  %v432_v14 = vpop.f32.mrb[24].mxu0 }
 0x11a   : > { %v433_v15 = vadd.f32 %v432_v14, %v1269_v54  ;;  %v434_v16 = vpop.f32.mrb[25].mxu0 }
 0x11b   : > { %v435_v17 = vadd.f32 %v434_v16, %v1271_v55  ;;  %v436_v18 = vpop.f32.mrb[26].mxu0  ;;  %706 = vmatprep.mubr.bf16.mxu1 %v494_v13 }
 0x11c   : > { %v437_v19 = vadd.f32 %v436_v18, %v1269_v54  ;;  %v438_v20 = vpop.f32.mrb[27].mxu0  ;;  %707 = vmatmul.mubr.bf16.gmra.mrb[16].mxu1 %v493_v12  ;;  %v475_v22 = vmax.f32 %v433_v15, 0.0 }
 0x11d   : > { %v439_v21 = vadd.f32 %v438_v20, %v1271_v55  ;;  %v476_v24 = vmax.f32 %v435_v17, 0.0 }
 0x11e   : > { %v477_v23 = vmax.f32 %v437_v19, 0.0 }
 0x11f   : > { %v478_v25 = vmax.f32 %v439_v21, 0.0 }
 0x120   : > { %v495_v26 = vpack.c.bf16 %v477_v23, %v475_v22 }
 0x121   : > { %v496_v27 = vpack.c.bf16 %v478_v25, %v476_v24  ;;  %v442_v28 = vpop.f32.mrb[28].mxu0 }
 0x122   : > { %v443_v29 = vadd.f32 %v442_v28, %v1269_v54  ;;  %v444_v30 = vpop.f32.mrb[29].mxu0 }
 0x123   : > { %v445_v31 = vadd.f32 %v444_v30, %v1271_v55  ;;  %v446_v32 = vpop.f32.mrb[30].mxu0  ;;  %714 = vmatprep.mubr.bf16.mxu1 %v496_v27 }
 0x124   : > { %v447_v33 = vadd.f32 %v446_v32, %v1269_v54  ;;  %v448_v34 = vpop.f32.mrb[31].mxu0  ;;  %715 = vmatmul.mubr.bf16.gmra.mrb[20].mxu1 %v495_v26  ;;  %v479_v36 = vmax.f32 %v443_v29, 0.0  ;;  %v1308_v54 = vld [vmem:[%s1347_s4] ss:$0 sm:$0xff] }
 0x125   : > { %v449_v35 = vadd.f32 %v448_v34, %v1271_v55  ;;  %v480_v38 = vmax.f32 %v445_v31, 0.0 }
 0x126   : > { %v481_v37 = vmax.f32 %v447_v33, 0.0 }
 0x127   : > { %v482_v39 = vmax.f32 %v449_v35, 0.0 }
 0x128   : > { %v497_v40 = vpack.c.bf16 %v481_v37, %v479_v36 }
 0x129   : > { %v498_v41 = vpack.c.bf16 %v482_v39, %v480_v38 }
 0x12b   : > { %722 = vmatprep.mubr.bf16.mxu1 %v498_v41 }
 0x12c   : > { %723 = vmatmul.mubr.bf16.gmra.mrb[24].mxu1 %v497_v40 }
 0x1c7   : > { %v1006_v42 = vpop.f32.mrb[32].mxu0 }
 0x1c8   : > { %v1007_v43 = vpop.f32.mrb[33].mxu0 }
 0x1c9   : > { %v1008_v44 = vadd.f32 %v1007_v43, %v1006_v42  ;;  %v1009_v45 = vpop.f32.mrb[34].mxu0 }
 0x1ca   : > { %v1010_v46 = vpop.f32.mrb[35].mxu0 }
 0x1cb   : > { %v1011_v55 = vadd.f32 %v1010_v46, %v1009_v45  ;;  %v669_v47 = vadd.f32 %v1008_v44, %v1308_v54 }
 0x1cd   : > { %v672_v48 = vadd.f32 %v1011_v55, %v1308_v54 }
 0x1cf   : > { %v946_v49 = vpack.c.bf16 %v672_v48, %v669_v47  ;;  %v1012_v50 = vpop.f32.mrb[0].mxu1 }
 0x1d0   : > { %v1013_v51 = vpop.f32.mrb[1].mxu1 }
 0x1d1   : > { %947 = vst [vmem:[%s1316_s9] sm:$0xff] %v946_v49   ;;  %v1014_v52 = vadd.f32 %v1013_v51, %v1012_v50  ;;  %v1015_v53 = vpop.f32.mrb[2].mxu1 }
 0x1d2   : > { %v1016_v56 = vpop.f32.mrb[3].mxu1 }
 0x1d3   : > { %v1017_v57 = vadd.f32 %v1016_v56, %v1015_v53  ;;  %v677_v58 = vadd.f32 %v1014_v52, %v1308_v54 }
 0x1d5   : > { %v680_v59 = vadd.f32 %v1017_v57, %v1308_v54 }
 0x1d7   : > { %v951_v60 = vpack.c.bf16 %v680_v59, %v677_v58  ;;  %v1018_v61 = vpop.f32.mrb[4].mxu1 }
 0x1d8   : > { %v1019_v62 = vpop.f32.mrb[5].mxu1 }
 0x1d9   : > { %983 = vst [vmem:[%s1316_s9 + $0x8] sm:$0xff] %v951_v60   ;;  %v1020_v63 = vadd.f32 %v1019_v62, %v1018_v61  ;;  %v1021_v0 = vpop.f32.mrb[6].mxu1 }
 0x1da   : > { %v1022_v1 = vpop.f32.mrb[7].mxu1 }
 0x1db   : > { %v1023_v2 = vadd.f32 %v1022_v1, %v1021_v0  ;;  %v685_v3 = vadd.f32 %v1020_v63, %v1308_v54 }
 0x1dd   : > { %v688_v4 = vadd.f32 %v1023_v2, %v1308_v54 }
 0x1df   : > { %v956_v5 = vpack.c.bf16 %v688_v4, %v685_v3  ;;  %v1024_v6 = vpop.f32.mrb[8].mxu1 }
 0x1e0   : > { %v1025_v7 = vpop.f32.mrb[9].mxu1 }
 0x1e1   : > { %984 = vst [vmem:[%s1316_s9 + $0x10] sm:$0xff] %v956_v5   ;;  %v1026_v8 = vadd.f32 %v1025_v7, %v1024_v6  ;;  %v1027_v9 = vpop.f32.mrb[10].mxu1 }
 0x1e2   : > { %v1028_v10 = vpop.f32.mrb[11].mxu1 }
 0x1e3   : > { %v1029_v11 = vadd.f32 %v1028_v10, %v1027_v9  ;;  %v693_v12 = vadd.f32 %v1026_v8, %v1308_v54 }
 0x1e5   : > { %v696_v13 = vadd.f32 %v1029_v11, %v1308_v54 }
 0x1e7   : > { %v961_v14 = vpack.c.bf16 %v696_v13, %v693_v12  ;;  %v1030_v15 = vpop.f32.mrb[12].mxu1 }
 0x1e8   : > { %v1031_v16 = vpop.f32.mrb[13].mxu1 }
 0x1e9   : > { %985 = vst [vmem:[%s1316_s9 + $0x18] sm:$0xff] %v961_v14   ;;  %v1032_v17 = vadd.f32 %v1031_v16, %v1030_v15  ;;  %v1033_v18 = vpop.f32.mrb[14].mxu1 }
 0x1ea   : > { %v1034_v19 = vpop.f32.mrb[15].mxu1 }
 0x1eb   : > { %v1035_v20 = vadd.f32 %v1034_v19, %v1033_v18  ;;  %v701_v21 = vadd.f32 %v1032_v17, %v1308_v54 }
 0x1ed   : > { %v704_v22 = vadd.f32 %v1035_v20, %v1308_v54 }
 0x1ef   : > { %v966_v23 = vpack.c.bf16 %v704_v22, %v701_v21  ;;  %v1036_v24 = vpop.f32.mrb[16].mxu1 }
 0x1f0   : > { %v1037_v25 = vpop.f32.mrb[17].mxu1 }
 0x1f1   : > { %986 = vst [vmem:[%s1316_s9 + $0x20] sm:$0xff] %v966_v23   ;;  %v1038_v26 = vadd.f32 %v1037_v25, %v1036_v24  ;;  %v1039_v27 = vpop.f32.mrb[18].mxu1 }
 0x1f2   : > { %v1040_v28 = vpop.f32.mrb[19].mxu1 }
 0x1f3   : > { %v1041_v29 = vadd.f32 %v1040_v28, %v1039_v27  ;;  %v709_v30 = vadd.f32 %v1038_v26, %v1308_v54 }
 0x1f5   : > { %v712_v31 = vadd.f32 %v1041_v29, %v1308_v54 }
 0x1f7   : > { %v971_v32 = vpack.c.bf16 %v712_v31, %v709_v30  ;;  %v1042_v33 = vpop.f32.mrb[20].mxu1 }
 0x1f8   : > { %v1043_v34 = vpop.f32.mrb[21].mxu1 }
 0x1f9   : > { %987 = vst [vmem:[%s1316_s9 + $0x28] sm:$0xff] %v971_v32   ;;  %v1044_v35 = vadd.f32 %v1043_v34, %v1042_v33  ;;  %v1045_v36 = vpop.f32.mrb[22].mxu1 }
 0x1fa   : > { %v1046_v37 = vpop.f32.mrb[23].mxu1 }
 0x1fb   : > { %v1047_v38 = vadd.f32 %v1046_v37, %v1045_v36  ;;  %v717_v39 = vadd.f32 %v1044_v35, %v1308_v54 }
 0x1fd   : > { %v720_v40 = vadd.f32 %v1047_v38, %v1308_v54 }
 0x1ff   : > { %v976_v41 = vpack.c.bf16 %v720_v40, %v717_v39  ;;  %v1048_v42 = vpop.f32.mrb[24].mxu1 }
 0x200   : > { %v1049_v43 = vpop.f32.mrb[25].mxu1 }
 0x201   : > { %988 = vst [vmem:[%s1316_s9 + $0x30] sm:$0xff] %v976_v41   ;;  %v1050_v44 = vadd.f32 %v1049_v43, %v1048_v42  ;;  %v1051_v45 = vpop.f32.mrb[26].mxu1 }
 0x202   : > { %v1052_v46 = vpop.f32.mrb[27].mxu1 }
 0x203   : > { %v1053_v55 = vadd.f32 %v1052_v46, %v1051_v45  ;;  %v725_v47 = vadd.f32 %v1050_v44, %v1308_v54 }
 0x205   : > { %v728_v48 = vadd.f32 %v1053_v55, %v1308_v54 }
 0x207   : > { %v981_v49 = vpack.c.bf16 %v728_v48, %v725_v47 }
 0x209   : > { %989 = vst [vmem:[%s1316_s9 + $0x38] sm:$0xff] %v981_v49  }
 0x20a PF: > { %s15_s18 = sadd.s32 1, %s1113_s18  }
 0x20b   : > { %p12_p4 = scmp.ge.s32.totalorder %s15_s18, 4  }
 0x20d   :  { %14 = sbr.rel (!%p12_p4) target bundleno = 1 (0x1), region = 70 }

</bundles_post_ra>
